<compile_context>
chip_gen: v6e
topology: v6e:2x2x1
jax: 0.10.0
libtpu: 0.0.40
codegen_flags: <defaults>
</compile_context>

<pallas_src>
import functools

import jax
import jax.numpy as jnp
from jax.experimental import pallas as pl
from jax.experimental.pallas import tpu as pltpu


def _coupling_kernel(*refs, n_hidden, hidden_dim, half_dim, odd_flag, reverse,
                     has_mid, matmul_dtype):
    """refs = (x, W0, [Wmid_stack], Whead, b_all, out)."""
    x_ref = refs[0]
    if has_mid:
        w0_ref, wmid_ref, whead_ref, b_ref, out_ref = refs[1:]
    else:
        w0_ref, whead_ref, b_ref, out_ref = refs[1:]
        wmid_ref = None

    def mm(a, w):
        if matmul_dtype is not None:
            a = a.astype(matmul_dtype)  # weights already stored in matmul_dtype
        return jnp.dot(a, w, preferred_element_type=jnp.float32)

    # In both odd/even layouts the pass-through half keeps its lane position in
    # the output and the transformed half goes back where x1 was loaded from.
    if odd_flag:
        x2_sl, x1_sl = slice(half_dim, None), slice(0, half_dim)
    else:
        x2_sl, x1_sl = slice(0, half_dim), slice(half_dim, None)

    x2 = x_ref[:, x2_sl]
    # Write the pass-through half immediately: releases x2's live range before
    # the layer stack and avoids an XLU lane-concatenate at the end.
    out_ref[:, x2_sl] = x2.astype(out_ref.dtype)

    x2f = x2.astype(jnp.float32)
    b_all = b_ref[...]  # [n_hidden + 1, maxW], f32

    # self.net: Linear(half, hidden) + ReLU, then (hidden_layer-1) x [Linear + ReLU]
    h = jnp.maximum(mm(x2f, w0_ref[...]) + b_all[0:1, :hidden_dim], 0.0)
    for j in range(n_hidden - 1):
        h = jnp.maximum(mm(h, wmid_ref[j]) + b_all[j + 1:j + 2, :hidden_dim], 0.0)

    # Fused scale_net | trans_net head: one [hidden, 2*half] matmul, then slice.
    head = mm(h, whead_ref[...]) + b_all[n_hidden:n_hidden + 1, :2 * half_dim]
    scale = jnp.tanh(head[:, :half_dim])
    trans = head[:, half_dim:]

    # Deferred x1 load: not live across the MLP matmuls.
    x1 = x_ref[:, x1_sl].astype(jnp.float32)
    if reverse:
        y1 = (x1 - trans) * jnp.exp(-scale)
    else:
        y1 = x1 * jnp.exp(scale) + trans
    out_ref[:, x1_sl] = y1.astype(out_ref.dtype)


def _resident_spec(shape, single_buffer):
    """Full-array BlockSpec mapped to block 0 on every grid step."""
    n = len(shape)
    kwargs = {"pipeline_mode": pl.Buffered(1)} if single_buffer else {}
    return pl.BlockSpec(shape, lambda i, _n=n: (0,) * _n, **kwargs)


class Coupling:
    """JAX/Pallas port of the PyTorch `Coupling` module."""

    def __init__(self, input_dim, hidden_dim, hidden_layer, odd_flag, key,
                 matmul_dtype=None):
        self.odd_flag = odd_flag % 2
        self.input_dim = input_dim
        self.half_dim = input_dim // 2
        self.hidden_dim = hidden_dim
        self.hidden_layer = hidden_layer
        self.matmul_dtype = matmul_dtype  # e.g. jnp.bfloat16 on v6e/v7x

        def linear_init(k, fan_in, fan_out):
            # PyTorch nn.Linear default: U(-1/sqrt(fan_in), 1/sqrt(fan_in)).
            kw, kb = jax.random.split(k)
            bound = 1.0 / float(fan_in) ** 0.5
            W = jax.random.uniform(kw, (fan_in, fan_out), jnp.float32, -bound, bound)
            b = jax.random.uniform(kb, (fan_out,), jnp.float32, -bound, bound)
            return W, b

        keys = jax.random.split(key, hidden_layer + 2)
        half, hid = self.half_dim, hidden_dim
        wdt = jnp.float32 if matmul_dtype is None else matmul_dtype

        W0, b0 = linear_init(keys[0], half, hid)
        mids, mid_b = [], []
        for i in range(1, hidden_layer):
            W, b = linear_init(keys[i], hid, hid)
            mids.append(W)
            mid_b.append(b)
        Ws, bs = linear_init(keys[hidden_layer], hid, half)      # scale head
        Wt, bt = linear_init(keys[hidden_layer + 1], hid, half)  # trans head

        # Weights stored in matmul_dtype (bf16 halves DMA + resident VMEM on
        # v6e/v7x); biases stay f32.
        self.W0 = W0.astype(wdt)                                      # [half, hid]
        self.Wmid = jnp.stack(mids, 0).astype(wdt) if mids else None  # [L-1, hid, hid]
        self.Whead = jnp.concatenate([Ws, Wt], axis=1).astype(wdt)    # [hid, 2*half]
        bhead = jnp.concatenate([bs, bt], axis=0)                     # [2*half]

        maxw = max(hid, 2 * half)
        rows = [jnp.pad(b, (0, maxw - hid)) for b in [b0] + mid_b]
        rows.append(jnp.pad(bhead, (0, maxw - 2 * half)))
        self.b_all = jnp.stack(rows, axis=0)                          # [L+1, maxW] f32

    def _pick_tile_b(self, B):
        D, hid, half = self.input_dim, self.hidden_dim, self.half_dim
        # Approximate f32 bytes per batch row (in/out tiles + activations).
        row_bytes = 4 * (2 * D + 3 * hid + 4 * half)
        cap = (int((6 << 20) // max(row_bytes, 1)) // 512) * 512
        cap = max(512, min(4096, cap))
        if B <= cap:
            if hid >= 512 and B >= 1024:
                # Split a single-tile batch in two so dimension_semantics
                # ("parallel",) can shard across both v7x TensorCores when the
                # MLP is wide enough to be MXU-bound.
                return (((B + 1) // 2) + 7) // 8 * 8
            return B
        return cap

    def __call__(self, x, reverse):
        B, D = x.shape
        assert D == self.input_dim
        half, hid, L = self.half_dim, self.hidden_dim, self.hidden_layer

        tile_b = self._pick_tile_b(B)
        # No wrapper pad/slice: ragged last block is masked by Pallas.
        num_tiles = pl.cdiv(B, tile_b)

        has_mid = self.Wmid is not None
        params = [self.W0] + ([self.Wmid] if has_mid else []) + [self.Whead, self.b_all]
        args = (x, *params)
        param_bytes = sum(int(p.size) * p.dtype.itemsize for p in params)

        # Advisory cost estimate for the XLA scheduler.
        flops_per_row = 2 * (half * hid + (L - 1) * hid * hid + hid * 2 * half)
        cost = pl.CostEstimate(
            flops=int(B) * int(flops_per_row),
            transcendentals=int(B) * 2 * half,  # tanh + exp per output element
            bytes_accessed=int(2 * B * D * x.dtype.itemsize + param_bytes),
        )

        # Generation-aware VMEM cap (v7x has only 64 MiB per TensorCore).
        try:
            vmem_cap = int(pltpu.get_tpu_info().vmem_capacity_bytes)
        except Exception:
            vmem_cap = 64 << 20  # conservative default (v7x)

        kernel = functools.partial(
            _coupling_kernel,
            n_hidden=L, hidden_dim=hid, half_dim=half,
            odd_flag=self.odd_flag, reverse=bool(reverse),
            has_mid=has_mid, matmul_dtype=self.matmul_dtype,
        )

        def build(single_buffer):
            in_specs = [pl.BlockSpec((tile_b, D), lambda i: (i, 0))]
            in_specs += [_resident_spec(p.shape, single_buffer) for p in params]
            out_specs = pl.BlockSpec((tile_b, D), lambda i: (i, 0))
            # VMEM: double-buffered I/O tiles + (single|double)-buffered params
            # + in-kernel activation intermediates + slack.
            pfac = 1 if single_buffer else 2
            vmem_est = (2 * 2 * tile_b * D * x.dtype.itemsize
                        + pfac * param_bytes
                        + 4 * tile_b * (hid + 2 * half) * 4
                        + (2 << 20))
            vmem_limit = min(int(max(vmem_est, 32 << 20)), int(vmem_cap * 0.85))
            compiler_params = pltpu.CompilerParams(
                dimension_semantics=("parallel",),
                vmem_limit_bytes=vmem_limit,
            )
            return pl.pallas_call(
                kernel,
                out_shape=jax.ShapeDtypeStruct((B, D), x.dtype),
                grid=(num_tiles,),
                in_specs=in_specs,
                out_specs=out_specs,
                compiler_params=compiler_params,
                cost_estimate=cost,
            )

        try:
            # Single-buffer the grid-invariant weights/biases (halves their VMEM).
            return build(single_buffer=True)(*args)
        except Exception:
            # Fallback for Pallas versions that reject pl.Buffered(1).
            return build(single_buffer=False)(*args)

    # Pure-JAX reference (mirrors the PyTorch forward exactly) for validation.
    def reference(self, x, reverse):
        half, hid, L = self.half_dim, self.hidden_dim, self.hidden_layer

        def mm(a, w):
            if self.matmul_dtype is not None:
                a = a.astype(self.matmul_dtype)
            return jnp.dot(a, w, preferred_element_type=jnp.float32)

        if self.odd_flag:
            x1, x2 = x[:, :half], x[:, half:]
        else:
            x2, x1 = x[:, :half], x[:, half:]
        h = jnp.maximum(mm(x2.astype(jnp.float32), self.W0) + self.b_all[0, :hid], 0.0)
        for j in range(L - 1):
            h = jnp.maximum(mm(h, self.Wmid[j]) + self.b_all[j + 1, :hid], 0.0)
        head = mm(h, self.Whead) + self.b_all[L, :2 * half]
        scale = jnp.tanh(head[:, :half])
        trans = head[:, half:]
        if reverse:
            y1 = (x1 - trans) * jnp.exp(-scale)
        else:
            y1 = x1 * jnp.exp(scale) + trans
        if self.odd_flag:
            return jnp.concatenate((y1, x2), axis=1)
        return jnp.concatenate((x2, y1), axis=1)


if __name__ == "__main__":
    key = jax.random.PRNGKey(0)
    k_x, k_params, k_params2, k_big = jax.random.split(key, 4)

    batch, input_dim, hidden_dim, hidden_layer, odd_flag = 8, 16, 32, 2, 1

    x = jax.random.normal(k_x, (batch, input_dim), jnp.float32)
    coupling = Coupling(input_dim, hidden_dim, hidden_layer, odd_flag, k_params)

    # forward direction
    y_fwd = jax.block_until_ready(coupling(x, reverse=False))
    y_fwd_ref = coupling.reference(x, reverse=False)
    assert jnp.allclose(y_fwd, y_fwd_ref, rtol=1e-5, atol=1e-5), "forward mismatch"

    # reverse direction (should invert the forward pass)
    x_rec = jax.block_until_ready(coupling(y_fwd, reverse=True))
    x_rec_ref = coupling.reference(y_fwd_ref, reverse=True)
    assert jnp.allclose(x_rec, x_rec_ref, rtol=1e-5, atol=1e-5), "reverse mismatch"
    assert jnp.allclose(x_rec, x, rtol=1e-4, atol=1e-4), "coupling not invertible"

    # odd_flag=0 + hidden_layer=1 (no mid weights) + batch not a multiple of 8.
    c0 = Coupling(input_dim, hidden_dim, 1, 0, k_params2)
    x0 = jax.random.normal(k_x, (10, input_dim), jnp.float32)
    y0 = jax.block_until_ready(c0(x0, reverse=False))
    assert jnp.allclose(y0, c0.reference(x0, reverse=False), rtol=1e-5, atol=1e-5), \
        "even/1-layer forward mismatch"

    # Multi-tile ragged grid (no wrapper pad / slice): B=8195 -> 3 blocks of 4096,
    # last block has only 3 valid rows (store-masked by the BlockSpec).
    x_big = jax.random.normal(k_big, (8195, input_dim), jnp.float32)
    y_big = jax.block_until_ready(coupling(x_big, reverse=False))
    y_big_ref = coupling.reference(x_big, reverse=False)
    assert jnp.allclose(y_big, y_big_ref, rtol=1e-5, atol=1e-5), "tiled forward mismatch"
    x_big_rec = jax.block_until_ready(coupling(y_big, reverse=True))
    assert jnp.allclose(x_big_rec, x_big, rtol=1e-4, atol=1e-4), "tiled coupling not invertible"

    # bf16-stored weights / bf16 MXU operands (v6e/v7x fast path), f32 accumulation.
    cb = Coupling(input_dim, hidden_dim, hidden_layer, odd_flag, k_params,
                  matmul_dtype=jnp.bfloat16)
    xb = x_big[:1030]
    yb = jax.block_until_ready(cb(xb, reverse=False))
    assert jnp.allclose(yb, cb.reference(xb, reverse=False), rtol=2e-2, atol=2e-2), \
        "bf16 forward mismatch"

    print("KERNEL_OK")
</pallas_src>

<mosaic_0001>
module attributes {stable_mosaic.version = 11 : i64} {
  func.func @_coupling_kernel(%arg0: i32, %arg1: memref<8x16xf32, #tpu.memory_space<vmem>>, %arg2: memref<8x32xf32, #tpu.memory_space<vmem>>, %arg3: memref<1x32x32xf32, #tpu.memory_space<vmem>>, %arg4: memref<32x16xf32, #tpu.memory_space<vmem>>, %arg5: memref<3x32xf32, #tpu.memory_space<vmem>>, %arg6: memref<8x16xf32, #tpu.memory_space<vmem>>) attributes {dimension_semantics = [#tpu.dimension_semantics<parallel>], iteration_bounds = array<i64: 1>, scalar_prefetch = 0 : i64, scratch_operands = 0 : i64, tpu.core_type = #tpu.core_type<tc>, window_params = [{transform_indices = @transform_0, window_bounds = array<i64: 8, 16>}, {pipeline_mode = #tpu.pipeline_mode<synchronous>, transform_indices = @transform_1, window_bounds = array<i64: 8, 32>}, {pipeline_mode = #tpu.pipeline_mode<synchronous>, transform_indices = @transform_2, window_bounds = array<i64: 1, 32, 32>}, {pipeline_mode = #tpu.pipeline_mode<synchronous>, transform_indices = @transform_3, window_bounds = array<i64: 32, 16>}, {pipeline_mode = #tpu.pipeline_mode<synchronous>, transform_indices = @transform_4, window_bounds = array<i64: 3, 32>}, {transform_indices = @transform_5, window_bounds = array<i64: 8, 16>}]} {
    %c0 = arith.constant 0 : index
    %c8 = arith.constant 8 : index
    %0 = vector.load %arg1[%c0, %c8] : memref<8x16xf32, #tpu.memory_space<vmem>>, vector<8x8xf32>
    %c0_0 = arith.constant 0 : index
    %c8_1 = arith.constant 8 : index
    %1 = vector.load %arg6[%c0_0, %c8_1] : memref<8x16xf32, #tpu.memory_space<vmem>>, vector<8x8xf32>
    tpu.vector_store %arg6[%c0_0, %c8_1], %0 {strides = array<i32>} : memref<8x16xf32, #tpu.memory_space<vmem>>, vector<8x8xf32>,
    %c0_2 = arith.constant 0 : index
    %c0_3 = arith.constant 0 : index
    %2 = vector.load %arg5[%c0_2, %c0_3] : memref<3x32xf32, #tpu.memory_space<vmem>>, vector<3x32xf32>
    %c0_4 = arith.constant 0 : index
    %c0_5 = arith.constant 0 : index
    %3 = vector.load %arg2[%c0_4, %c0_5] : memref<8x32xf32, #tpu.memory_space<vmem>>, vector<8x32xf32>
    %cst = arith.constant dense<0.000000e+00> : vector<8x32xf32>
    %4 = tpu.matmul %0, %3, %cst {dimension_numbers = #tpu.dot_dimension_numbers<[1], [0], [0], [1], [0, 0, 1, 1], [], []>} : vector<8x8xf32>, vector<8x32xf32>, vector<8x32xf32> -> vector<8x32xf32>
    %5 = vector.extract_strided_slice %2 {offsets = [0, 0], sizes = [1, 32], strides = [1, 1]} : vector<3x32xf32> to vector<1x32xf32>
    %6 = vector.broadcast %5 : vector<1x32xf32> to vector<8x32xf32>
    %7 = arith.addf %4, %6 : vector<8x32xf32>
    %cst_6 = arith.constant 0.000000e+00 : f32
    %8 = vector.broadcast %cst_6 : f32 to vector<8x32xf32>
    %9 = arith.maximumf %7, %8 : vector<8x32xf32>
    %c0_7 = arith.constant 0 : index
    %c0_8 = arith.constant 0 : index
    %c0_9 = arith.constant 0 : index
    %10 = vector.load %arg3[%c0_7, %c0_8, %c0_9] : memref<1x32x32xf32, #tpu.memory_space<vmem>>, vector<1x32x32xf32>
    %11 = vector.shape_cast %10 : vector<1x32x32xf32> to vector<32x32xf32>
    %cst_10 = arith.constant dense<0.000000e+00> : vector<8x32xf32>
    %12 = tpu.matmul %9, %11, %cst_10 {dimension_numbers = #tpu.dot_dimension_numbers<[1], [0], [0], [1], [0, 0, 1, 1], [], []>} : vector<8x32xf32>, vector<32x32xf32>, vector<8x32xf32> -> vector<8x32xf32>
    %13 = vector.extract_strided_slice %2 {offsets = [1, 0], sizes = [1, 32], strides = [1, 1]} : vector<3x32xf32> to vector<1x32xf32>
    %14 = vector.broadcast %13 : vector<1x32xf32> to vector<8x32xf32>
    %15 = arith.addf %12, %14 : vector<8x32xf32>
    %cst_11 = arith.constant 0.000000e+00 : f32
    %16 = vector.broadcast %cst_11 : f32 to vector<8x32xf32>
    %17 = arith.maximumf %15, %16 : vector<8x32xf32>
    %c0_12 = arith.constant 0 : index
    %c0_13 = arith.constant 0 : index
    %18 = vector.load %arg4[%c0_12, %c0_13] : memref<32x16xf32, #tpu.memory_space<vmem>>, vector<32x16xf32>
    %cst_14 = arith.constant dense<0.000000e+00> : vector<8x16xf32>
    %19 = tpu.matmul %17, %18, %cst_14 {dimension_numbers = #tpu.dot_dimension_numbers<[1], [0], [0], [1], [0, 0, 1, 1], [], []>} : vector<8x32xf32>, vector<32x16xf32>, vector<8x16xf32> -> vector<8x16xf32>
    %20 = vector.extract_strided_slice %2 {offsets = [2, 0], sizes = [1, 16], strides = [1, 1]} : vector<3x32xf32> to vector<1x16xf32>
    %21 = vector.broadcast %20 : vector<1x16xf32> to vector<8x16xf32>
    %22 = arith.addf %19, %21 : vector<8x16xf32>
    %23 = vector.extract_strided_slice %22 {offsets = [0, 0], sizes = [8, 8], strides = [1, 1]} : vector<8x16xf32> to vector<8x8xf32>
    %24 = math.tanh %23 : vector<8x8xf32>
    %25 = vector.extract_strided_slice %22 {offsets = [0, 8], sizes = [8, 8], strides = [1, 1]} : vector<8x16xf32> to vector<8x8xf32>
    %c0_15 = arith.constant 0 : index
    %c0_16 = arith.constant 0 : index
    %26 = vector.load %arg1[%c0_15, %c0_16] : memref<8x16xf32, #tpu.memory_space<vmem>>, vector<8x8xf32>
    %27 = math.exp %24 : vector<8x8xf32>
    %28 = arith.mulf %26, %27 : vector<8x8xf32>
    %29 = arith.addf %28, %25 : vector<8x8xf32>
    %c0_17 = arith.constant 0 : index
    %c0_18 = arith.constant 0 : index
    %30 = vector.load %arg6[%c0_17, %c0_18] : memref<8x16xf32, #tpu.memory_space<vmem>>, vector<8x8xf32>
    tpu.vector_store %arg6[%c0_17, %c0_18], %29 {strides = array<i32>} : memref<8x16xf32, #tpu.memory_space<vmem>>, vector<8x8xf32>,
    return
  }
  func.func @transform_0(%arg0: i32) -> (i32, i32) {
    %c0_i32 = arith.constant 0 : i32
    %c0_i32_0 = arith.constant 0 : i32
    return %arg0, %c0_i32 : i32, i32
  }
  func.func @transform_1(%arg0: i32) -> (i32, i32) {
    %c0_i32 = arith.constant 0 : i32
    %c0_i32_0 = arith.constant 0 : i32
    %c0_i32_1 = arith.constant 0 : i32
    return %c0_i32, %c0_i32_0 : i32, i32
  }
  func.func @transform_2(%arg0: i32) -> (i32, i32, i32) {
    %c0_i32 = arith.constant 0 : i32
    %c0_i32_0 = arith.constant 0 : i32
    %c0_i32_1 = arith.constant 0 : i32
    %c0_i32_2 = arith.constant 0 : i32
    return %c0_i32, %c0_i32_0, %c0_i32_1 : i32, i32, i32
  }
  func.func @transform_3(%arg0: i32) -> (i32, i32) {
    %c0_i32 = arith.constant 0 : i32
    %c0_i32_0 = arith.constant 0 : i32
    %c0_i32_1 = arith.constant 0 : i32
    return %c0_i32, %c0_i32_0 : i32, i32
  }
  func.func @transform_4(%arg0: i32) -> (i32, i32) {
    %c0_i32 = arith.constant 0 : i32
    %c0_i32_0 = arith.constant 0 : i32
    %c0_i32_1 = arith.constant 0 : i32
    return %c0_i32, %c0_i32_0 : i32, i32
  }
  func.func @transform_5(%arg0: i32) -> (i32, i32) {
    %c0_i32 = arith.constant 0 : i32
    %c0_i32_0 = arith.constant 0 : i32
    return %arg0, %c0_i32 : i32, i32
  }
}

module attributes {stable_mosaic.version = 11 : i64} {
  func.func @_coupling_kernel(%arg0: i32, %arg1: memref<8x16xf32, #tpu.memory_space<vmem>>, %arg2: memref<8x32xf32, #tpu.memory_space<vmem>>, %arg3: memref<1x32x32xf32, #tpu.memory_space<vmem>>, %arg4: memref<32x16xf32, #tpu.memory_space<vmem>>, %arg5: memref<3x32xf32, #tpu.memory_space<vmem>>, %arg6: memref<8x16xf32, #tpu.memory_space<vmem>>) attributes {dimension_semantics = [#tpu.dimension_semantics<parallel>], iteration_bounds = array<i64: 1>, scalar_prefetch = 0 : i64, scratch_operands = 0 : i64, tpu.core_type = #tpu.core_type<tc>, window_params = [{transform_indices = @transform_0, window_bounds = array<i64: 8, 16>}, {pipeline_mode = #tpu.pipeline_mode<synchronous>, transform_indices = @transform_1, window_bounds = array<i64: 8, 32>}, {pipeline_mode = #tpu.pipeline_mode<synchronous>, transform_indices = @transform_2, window_bounds = array<i64: 1, 32, 32>}, {pipeline_mode = #tpu.pipeline_mode<synchronous>, transform_indices = @transform_3, window_bounds = array<i64: 32, 16>}, {pipeline_mode = #tpu.pipeline_mode<synchronous>, transform_indices = @transform_4, window_bounds = array<i64: 3, 32>}, {transform_indices = @transform_5, window_bounds = array<i64: 8, 16>}]} {
    %c0 = arith.constant 0 : index
    %c8 = arith.constant 8 : index
    %0 = vector.load %arg1[%c0, %c8] : memref<8x16xf32, #tpu.memory_space<vmem>>, vector<8x8xf32>
    %c0_0 = arith.constant 0 : index
    %c8_1 = arith.constant 8 : index
    %1 = vector.load %arg6[%c0_0, %c8_1] : memref<8x16xf32, #tpu.memory_space<vmem>>, vector<8x8xf32>
    tpu.vector_store %arg6[%c0_0, %c8_1], %0 {strides = array<i32>} : memref<8x16xf32, #tpu.memory_space<vmem>>, vector<8x8xf32>,
    %c0_2 = arith.constant 0 : index
    %c0_3 = arith.constant 0 : index
    %2 = vector.load %arg5[%c0_2, %c0_3] : memref<3x32xf32, #tpu.memory_space<vmem>>, vector<3x32xf32>
    %c0_4 = arith.constant 0 : index
    %c0_5 = arith.constant 0 : index
    %3 = vector.load %arg2[%c0_4, %c0_5] : memref<8x32xf32, #tpu.memory_space<vmem>>, vector<8x32xf32>
    %cst = arith.constant dense<0.000000e+00> : vector<8x32xf32>
    %4 = tpu.matmul %0, %3, %cst {dimension_numbers = #tpu.dot_dimension_numbers<[1], [0], [0], [1], [0, 0, 1, 1], [], []>} : vector<8x8xf32>, vector<8x32xf32>, vector<8x32xf32> -> vector<8x32xf32>
    %5 = vector.extract_strided_slice %2 {offsets = [0, 0], sizes = [1, 32], strides = [1, 1]} : vector<3x32xf32> to vector<1x32xf32>
    %6 = vector.broadcast %5 : vector<1x32xf32> to vector<8x32xf32>
    %7 = arith.addf %4, %6 : vector<8x32xf32>
    %cst_6 = arith.constant 0.000000e+00 : f32
    %8 = vector.broadcast %cst_6 : f32 to vector<8x32xf32>
    %9 = arith.maximumf %7, %8 : vector<8x32xf32>
    %c0_7 = arith.constant 0 : index
    %c0_8 = arith.constant 0 : index
    %c0_9 = arith.constant 0 : index
    %10 = vector.load %arg3[%c0_7, %c0_8, %c0_9] : memref<1x32x32xf32, #tpu.memory_space<vmem>>, vector<1x32x32xf32>
    %11 = vector.shape_cast %10 : vector<1x32x32xf32> to vector<32x32xf32>
    %cst_10 = arith.constant dense<0.000000e+00> : vector<8x32xf32>
    %12 = tpu.matmul %9, %11, %cst_10 {dimension_numbers = #tpu.dot_dimension_numbers<[1], [0], [0], [1], [0, 0, 1, 1], [], []>} : vector<8x32xf32>, vector<32x32xf32>, vector<8x32xf32> -> vector<8x32xf32>
    %13 = vector.extract_strided_slice %2 {offsets = [1, 0], sizes = [1, 32], strides = [1, 1]} : vector<3x32xf32> to vector<1x32xf32>
    %14 = vector.broadcast %13 : vector<1x32xf32> to vector<8x32xf32>
    %15 = arith.addf %12, %14 : vector<8x32xf32>
    %cst_11 = arith.constant 0.000000e+00 : f32
    %16 = vector.broadcast %cst_11 : f32 to vector<8x32xf32>
    %17 = arith.maximumf %15, %16 : vector<8x32xf32>
    %c0_12 = arith.constant 0 : index
    %c0_13 = arith.constant 0 : index
    %18 = vector.load %arg4[%c0_12, %c0_13] : memref<32x16xf32, #tpu.memory_space<vmem>>, vector<32x16xf32>
    %cst_14 = arith.constant dense<0.000000e+00> : vector<8x16xf32>
    %19 = tpu.matmul %17, %18, %cst_14 {dimension_numbers = #tpu.dot_dimension_numbers<[1], [0], [0], [1], [0, 0, 1, 1], [], []>} : vector<8x32xf32>, vector<32x16xf32>, vector<8x16xf32> -> vector<8x16xf32>
    %20 = vector.extract_strided_slice %2 {offsets = [2, 0], sizes = [1, 16], strides = [1, 1]} : vector<3x32xf32> to vector<1x16xf32>
    %21 = vector.broadcast %20 : vector<1x16xf32> to vector<8x16xf32>
    %22 = arith.addf %19, %21 : vector<8x16xf32>
    %23 = vector.extract_strided_slice %22 {offsets = [0, 0], sizes = [8, 8], strides = [1, 1]} : vector<8x16xf32> to vector<8x8xf32>
    %24 = math.tanh %23 : vector<8x8xf32>
    %25 = vector.extract_strided_slice %22 {offsets = [0, 8], sizes = [8, 8], strides = [1, 1]} : vector<8x16xf32> to vector<8x8xf32>
    %c0_15 = arith.constant 0 : index
    %c0_16 = arith.constant 0 : index
    %26 = vector.load %arg1[%c0_15, %c0_16] : memref<8x16xf32, #tpu.memory_space<vmem>>, vector<8x8xf32>
    %27 = math.exp %24 : vector<8x8xf32>
    %28 = arith.mulf %26, %27 : vector<8x8xf32>
    %29 = arith.addf %28, %25 : vector<8x8xf32>
    %c0_17 = arith.constant 0 : index
    %c0_18 = arith.constant 0 : index
    %30 = vector.load %arg6[%c0_17, %c0_18] : memref<8x16xf32, #tpu.memory_space<vmem>>, vector<8x8xf32>
    tpu.vector_store %arg6[%c0_17, %c0_18], %29 {strides = array<i32>} : memref<8x16xf32, #tpu.memory_space<vmem>>, vector<8x8xf32>,
    return
  }
  func.func @transform_0(%arg0: i32) -> (i32, i32) {
    %c0_i32 = arith.constant 0 : i32
    %c0_i32_0 = arith.constant 0 : i32
    return %arg0, %c0_i32 : i32, i32
  }
  func.func @transform_1(%arg0: i32) -> (i32, i32) {
    %c0_i32 = arith.constant 0 : i32
    %c0_i32_0 = arith.constant 0 : i32
    %c0_i32_1 = arith.constant 0 : i32
    return %c0_i32, %c0_i32_0 : i32, i32
  }
  func.func @transform_2(%arg0: i32) -> (i32, i32, i32) {
    %c0_i32 = arith.constant 0 : i32
    %c0_i32_0 = arith.constant 0 : i32
    %c0_i32_1 = arith.constant 0 : i32
    %c0_i32_2 = arith.constant 0 : i32
    return %c0_i32, %c0_i32_0, %c0_i32_1 : i32, i32, i32
  }
  func.func @transform_3(%arg0: i32) -> (i32, i32) {
    %c0_i32 = arith.constant 0 : i32
    %c0_i32_0 = arith.constant 0 : i32
    %c0_i32_1 = arith.constant 0 : i32
    return %c0_i32, %c0_i32_0 : i32, i32
  }
  func.func @transform_4(%arg0: i32) -> (i32, i32) {
    %c0_i32 = arith.constant 0 : i32
    %c0_i32_0 = arith.constant 0 : i32
    %c0_i32_1 = arith.constant 0 : i32
    return %c0_i32, %c0_i32_0 : i32, i32
  }
  func.func @transform_5(%arg0: i32) -> (i32, i32) {
    %c0_i32 = arith.constant 0 : i32
    %c0_i32_0 = arith.constant 0 : i32
    return %arg0, %c0_i32 : i32, i32
  }
}

</mosaic_0001>

<bundles_post_ra>
// kernel: tpu_custom_call.1
= control target key start
LH: loop header
LB: loop body
LE: loop exit
PB: predicated region body
PF: predicated region fallthrough
CT: control target
= control target key end

     0   :  { %vm22_vm0 = vcmask 130112   ;;  %s368_s22 = smov 120   ;;  %v369_v2 = vmov 0.0   ;;  %s449_s0 = inlined_call_operand.vmem [shape: f32[8,16], index: 0, kind: input, shape index: {}]   ;;  %s450_s1 = inlined_call_operand.vmem [shape: f32[8,32], index: 1, kind: input, shape index: {}]   ;;  %s451_s2 = inlined_call_operand.vmem [shape: f32[1,32,32], index: 2, kind: input, shape index: {}]   ;;  %s452_s3 = inlined_call_operand.vmem [shape: f32[32,16], index: 3, kind: input, shape index: {}]   ;;  %s453_s4 = inlined_call_operand.vmem [shape: f32[3,32], index: 4, kind: input, shape index: {}]   ;;  %s454_s5 = inlined_call_operand.hbm [shape: f32[8,16], index: 5, kind: output, shape index: {}]  }
   0x1   :  { %v405_v0 = vld [vmem:[%s449_s0] sm:$0xff]  ;;  %311 = vmatprep.subr.mxu0 %v369_v2  ;;  %v110_v3 = vld [vmem:[%s451_s2 + $0x18] sm:$0xff] }
   0x2   :  { %v25_v1 = vld [vmem:[%s450_s1] sm:$0xff]  ;;  %31 = vrot.lane.b32.xlu0 %v405_v0, %s368_s22  ;;  %23 = vst.msk [vmem:[#allocation2] sm:$0xff] %vm22_vm0, %v405_v0 }
   0x3   :  { %10 = vsyncpa [#allocation3], 0  ;;  %312 = vmatpush3.msra.mxu0 %v25_v1  ;;  %vm370_vm1 = vmmov 0   ;;  %316 = vmatprep.subr.mxu1 %v369_v2  ;;  %vm33_vm2 = vcmask 64512   ;;  %v109_v5 = vld [vmem:[%s451_s2 + $0x10] sm:$0xff]  ;;  %v108_v6 = vld [vmem:[%s451_s2 + $0x8] sm:$0xff]  ;;  %v26_v9 = vlaneseq }
   0x4   :  { %313 = vmatprep.mubr.msk.f32.mxu0 %vm370_vm1, %v369_v2  ;;  %324 = vmatprep.mubr.msk.f32.mxu1 %vm370_vm1, %v369_v2  ;;  %v107_v7 = vld [vmem:[%s451_s2] sm:$0xff]  ;;  %v193_v8 = vld [vmem:[%s452_s3 + $0x18] sm:$0xff]  ;;  %vm115_vm3 = vcmask 261120   ;;  %v192_v18 = vld [vmem:[%s452_s3 + $0x10] sm:$0xff] }
   0x5   :  { %317 = vmatpush3.msra.mxu1 %v110_v3  ;;  %327 = vmatprep.subr.mxu0 %v369_v2  ;;  %v27_v10 = vshrl.u32 %v26_v9, 7  ;;  %v24_v12 = vld [vmem:[%s453_s4] sm:$0x7]  ;;  %v191_v19 = vld [vmem:[%s452_s3 + $0x8] sm:$0xff] }
   0x6   :  { %318 = vmatprep.subr.mxu1 %v369_v2  ;;  %v190_v20 = vld [vmem:[%s452_s3] sm:$0xff]  ;;  %s371_s3 = smov [#allocation2]  }
   0x7   :  { %319 = vmatpush3.msra.mxu1 %v109_v5  ;;  %v28_v11 = vsub.s32 0, %v27_v10  ;;  %v113_v21 = vsub.s32 1, %v27_v10  ;;  %v196_v27 = vsub.s32 2, %v27_v10  ;;  %s288_s12 = sshll.u32 %s371_s3, 4  ;;  %s289_s12 = int_to_ptr.vmem [resolvable:$true] %s288_s12 }
   0x8   :  { %320 = vmatprep.subr.mxu1 %v369_v2  ;;  %s346_s13 = scalar_lea.vmem %s289_s12, 128  ;;  %p351_p1 = scmp.lt.s32.totalorder %s289_s12, %s289_s12 }
   0x9   :  { %321 = vmatpush3.msra.mxu1 %v108_v6  ;;  %v29_v13 = vrot.slane %v24_v12, %v28_v11  ;;  %v114_v22 = vrot.slane %v24_v12, %v113_v21  ;;  %v197_v28 = vrot.slane %v24_v12, %v196_v27  ;;  %p347_p0 = scmp.ne.s32.totalorder %s289_s12, %s346_s13  ;;  %p352_p2 = scmp.lt.s32.totalorder %s346_s13, %s346_s13 }
   0xa   :  { %322 = vmatprep.subr.mxu1 %v369_v2 }
   0xb   :  { %323 = vmatpush3.msra.mxu1 %v107_v7  ;;  %p353_p3 = por %p352_p2, %p351_p1 }
   0xd   :  { %p354_p4 = pnand %p353_p3, %p347_p0 }
  0x74   :  { %v32_v4 = vpop.permute.xlu0 %31 }
  0x75   :  { %314 = vmatmul.mubr.msk.f32.vlgmr.msra.gmra.mxu0 %vm33_vm2, %v32_v4 }
  0x76   :  { %335 = vmatprep.mubr.msk.f32.mxu0 %vm370_vm1, %v369_v2  ;;  %328 = vmatpush3.msra.mxu0 %v193_v8 }
  0x77   :  { %329 = vmatprep.subr.mxu0 %v369_v2 }
  0x78   :  { %330 = vmatpush3.msra.mxu0 %v192_v18 }
  0x79   :  { %331 = vmatprep.subr.mxu0 %v369_v2 }
  0x7a   :  { %332 = vmatpush3.msra.mxu0 %v191_v19 }
  0x7b   :  { %333 = vmatprep.subr.mxu0 %v369_v2 }
  0x7c   :  { %334 = vmatpush3.msra.mxu0 %v190_v20 }
 0x135   :  { %v102_v14 = vpop.f32.mrf.mxu0 }
 0x136   :  { %v103_v15 = vadd.f32 %v102_v14, %v29_v13 }
 0x137   :  { %v315_v16 = vpop.f32.mrf.mxu0 }
 0x138   :  { %v106_v17 = vmax.f32 %v103_v15, 0.0 }
 0x13a   :  { %325 = vmatmul.mubr.msk.f32.vlgmr.msra.gmra.mxu1 %vm115_vm3, %v106_v17 }
 0x1fa   :  { %v185_v23 = vpop.f32.mrf.mxu1 }
 0x1fb   :  { %v186_v24 = vadd.f32 %v185_v23, %v114_v22 }
 0x1fc   :  { %v326_v25 = vpop.f32.mrf.mxu1 }
 0x1fd   :  { %v189_v26 = vmax.f32 %v186_v24, 0.0 }
 0x1ff   :  { %336 = vmatmul.mubr.msk.f32.vlgmr.msra.gmra.mxu0 %vm115_vm3, %v189_v26 }
 0x2bf   :  { %v267_v29 = vpop.f32.mrf.mxu0 }
 0x2c0   :  { %v268_v30 = vadd.f32 %v267_v29, %v197_v28 }
 0x2c1   :  { %v337_v31 = vpop.f32.mrf.mxu0 }
 0x2c2   :  { %277 = vrot.lane.b32.xlu0 %v268_v30, %s368_s22  ;;  %342 = vtanh.f32 %v268_v30 }
 0x2cf   :  { %v343_v32 = vpop.eup %342 }
 0x2d0   :  { %v273_v33 = vmul.f32 1.442695, %v343_v32 }
 0x2d2   :  { %344 = vpow2.f32 %v273_v33 }
 0x2df   :  { %v345_v34 = vpop.eup %344 }
 0x2e0   :  { %v275_v35 = vmul.f32 %v345_v34, %v405_v0 }
 0x334   :  { %v278_v36 = vpop.permute.xlu0 %277 }
 0x335   :  { %v280_v37 = vadd.f32 %v278_v36, %v275_v35 }
 0x337   :  { %281 = vst.msk [vmem:[#allocation2] sm:$0xff] %vm33_vm2, %v280_v37 }
 0x338   :  { %357 = shalt.err (!%p354_p4)
}
 0x339   :  { %291 = dma.vmem_to_hbm [thread:$0]  %s289_s12, 128, %s454_s5, [#allocation3]  }
 0x33a   :  { %366 = dma.done.wait [#allocation3], 128  }
 0x33b   :  { %367 = vsyncadd [#allocation3], 4294967168 }
 0x33c   :  { %295 = vsyncpa [#allocation3], 1 }

// kernel: tpu_custom_call.1
= control target key start
LH: loop header
LB: loop body
LE: loop exit
PB: predicated region body
PF: predicated region fallthrough
CT: control target
= control target key end

     0   :  { %vm22_vm0 = vcmask 130112   ;;  %s368_s22 = smov 120   ;;  %v369_v2 = vmov 0.0   ;;  %s449_s0 = inlined_call_operand.vmem [shape: f32[8,16], index: 0, kind: input, shape index: {}]   ;;  %s450_s1 = inlined_call_operand.vmem [shape: f32[8,32], index: 1, kind: input, shape index: {}]   ;;  %s451_s2 = inlined_call_operand.vmem [shape: f32[1,32,32], index: 2, kind: input, shape index: {}]   ;;  %s452_s3 = inlined_call_operand.vmem [shape: f32[32,16], index: 3, kind: input, shape index: {}]   ;;  %s453_s4 = inlined_call_operand.vmem [shape: f32[3,32], index: 4, kind: input, shape index: {}]   ;;  %s454_s5 = inlined_call_operand.hbm [shape: f32[8,16], index: 5, kind: output, shape index: {}]  }
   0x1   :  { %v405_v0 = vld [vmem:[%s449_s0] sm:$0xff]  ;;  %311 = vmatprep.subr.mxu0 %v369_v2  ;;  %v110_v3 = vld [vmem:[%s451_s2 + $0x18] sm:$0xff] }
   0x2   :  { %v25_v1 = vld [vmem:[%s450_s1] sm:$0xff]  ;;  %31 = vrot.lane.b32.xlu0 %v405_v0, %s368_s22  ;;  %23 = vst.msk [vmem:[#allocation2] sm:$0xff] %vm22_vm0, %v405_v0 }
   0x3   :  { %10 = vsyncpa [#allocation3], 0  ;;  %312 = vmatpush3.msra.mxu0 %v25_v1  ;;  %vm370_vm1 = vmmov 0   ;;  %316 = vmatprep.subr.mxu1 %v369_v2  ;;  %vm33_vm2 = vcmask 64512   ;;  %v109_v5 = vld [vmem:[%s451_s2 + $0x10] sm:$0xff]  ;;  %v108_v6 = vld [vmem:[%s451_s2 + $0x8] sm:$0xff]  ;;  %v26_v9 = vlaneseq }
   0x4   :  { %313 = vmatprep.mubr.msk.f32.mxu0 %vm370_vm1, %v369_v2  ;;  %324 = vmatprep.mubr.msk.f32.mxu1 %vm370_vm1, %v369_v2  ;;  %v107_v7 = vld [vmem:[%s451_s2] sm:$0xff]  ;;  %v193_v8 = vld [vmem:[%s452_s3 + $0x18] sm:$0xff]  ;;  %vm115_vm3 = vcmask 261120   ;;  %v192_v18 = vld [vmem:[%s452_s3 + $0x10] sm:$0xff] }
   0x5   :  { %317 = vmatpush3.msra.mxu1 %v110_v3  ;;  %327 = vmatprep.subr.mxu0 %v369_v2  ;;  %v27_v10 = vshrl.u32 %v26_v9, 7  ;;  %v24_v12 = vld [vmem:[%s453_s4] sm:$0x7]  ;;  %v191_v19 = vld [vmem:[%s452_s3 + $0x8] sm:$0xff] }
   0x6   :  { %318 = vmatprep.subr.mxu1 %v369_v2  ;;  %v190_v20 = vld [vmem:[%s452_s3] sm:$0xff]  ;;  %s371_s3 = smov [#allocation2]  }
   0x7   :  { %319 = vmatpush3.msra.mxu1 %v109_v5  ;;  %v28_v11 = vsub.s32 0, %v27_v10  ;;  %v113_v21 = vsub.s32 1, %v27_v10  ;;  %v196_v27 = vsub.s32 2, %v27_v10  ;;  %s288_s12 = sshll.u32 %s371_s3, 4  ;;  %s289_s12 = int_to_ptr.vmem [resolvable:$true] %s288_s12 }
   0x8   :  { %320 = vmatprep.subr.mxu1 %v369_v2  ;;  %s346_s13 = scalar_lea.vmem %s289_s12, 128  ;;  %p351_p1 = scmp.lt.s32.totalorder %s289_s12, %s289_s12 }
   0x9   :  { %321 = vmatpush3.msra.mxu1 %v108_v6  ;;  %v29_v13 = vrot.slane %v24_v12, %v28_v11  ;;  %v114_v22 = vrot.slane %v24_v12, %v113_v21  ;;  %v197_v28 = vrot.slane %v24_v12, %v196_v27  ;;  %p347_p0 = scmp.ne.s32.totalorder %s289_s12, %s346_s13  ;;  %p352_p2 = scmp.lt.s32.totalorder %s346_s13, %s346_s13 }
   0xa   :  { %322 = vmatprep.subr.mxu1 %v369_v2 }
   0xb   :  { %323 = vmatpush3.msra.mxu1 %v107_v7  ;;  %p353_p3 = por %p352_p2, %p351_p1 }
   0xd   :  { %p354_p4 = pnand %p353_p3, %p347_p0 }
  0x74   :  { %v32_v4 = vpop.permute.xlu0 %31 }
  0x75   :  { %314 = vmatmul.mubr.msk.f32.vlgmr.msra.gmra.mxu0 %vm33_vm2, %v32_v4 }
  0x76   :  { %335 = vmatprep.mubr.msk.f32.mxu0 %vm370_vm1, %v369_v2  ;;  %328 = vmatpush3.msra.mxu0 %v193_v8 }
  0x77   :  { %329 = vmatprep.subr.mxu0 %v369_v2 }
  0x78   :  { %330 = vmatpush3.msra.mxu0 %v192_v18 }
  0x79   :  { %331 = vmatprep.subr.mxu0 %v369_v2 }
  0x7a   :  { %332 = vmatpush3.msra.mxu0 %v191_v19 }
  0x7b   :  { %333 = vmatprep.subr.mxu0 %v369_v2 }
  0x7c   :  { %334 = vmatpush3.msra.mxu0 %v190_v20 }
 0x135   :  { %v102_v14 = vpop.f32.mrf.mxu0 }
 0x136   :  { %v103_v15 = vadd.f32 %v102_v14, %v29_v13 }
 0x137   :  { %v315_v16 = vpop.f32.mrf.mxu0 }
 0x138   :  { %v106_v17 = vmax.f32 %v103_v15, 0.0 }
 0x13a   :  { %325 = vmatmul.mubr.msk.f32.vlgmr.msra.gmra.mxu1 %vm115_vm3, %v106_v17 }
 0x1fa   :  { %v185_v23 = vpop.f32.mrf.mxu1 }
 0x1fb   :  { %v186_v24 = vadd.f32 %v185_v23, %v114_v22 }
 0x1fc   :  { %v326_v25 = vpop.f32.mrf.mxu1 }
 0x1fd   :  { %v189_v26 = vmax.f32 %v186_v24, 0.0 }
 0x1ff   :  { %336 = vmatmul.mubr.msk.f32.vlgmr.msra.gmra.mxu0 %vm115_vm3, %v189_v26 }
 0x2bf   :  { %v267_v29 = vpop.f32.mrf.mxu0 }
 0x2c0   :  { %v268_v30 = vadd.f32 %v267_v29, %v197_v28 }
 0x2c1   :  { %v337_v31 = vpop.f32.mrf.mxu0 }
 0x2c2   :  { %277 = vrot.lane.b32.xlu0 %v268_v30, %s368_s22  ;;  %342 = vtanh.f32 %v268_v30 }
 0x2cf   :  { %v343_v32 = vpop.eup %342 }
 0x2d0   :  { %v273_v33 = vmul.f32 1.442695, %v343_v32 }
 0x2d2   :  { %344 = vpow2.f32 %v273_v33 }
 0x2df   :  { %v345_v34 = vpop.eup %344 }
 0x2e0   :  { %v275_v35 = vmul.f32 %v345_v34, %v405_v0 }
 0x334   :  { %v278_v36 = vpop.permute.xlu0 %277 }
 0x335   :  { %v280_v37 = vadd.f32 %v278_v36, %v275_v35 }
 0x337   :  { %281 = vst.msk [vmem:[#allocation2] sm:$0xff] %vm33_vm2, %v280_v37 }
 0x338   :  { %357 = shalt.err (!%p354_p4)
}
 0x339   :  { %291 = dma.vmem_to_hbm [thread:$0]  %s289_s12, 128, %s454_s5, [#allocation3]  }
 0x33a   :  { %366 = dma.done.wait [#allocation3], 128  }
 0x33b   :  { %367 = vsyncadd [#allocation3], 4294967168 }
 0x33c   :  { %295 = vsyncpa [#allocation3], 1 }

</bundles_post_ra>
